<compile_context>
chip_gen: v7x
topology: tpu7x:2x2x1
jax: 0.10.0
libtpu: 0.0.40
codegen_flags: <defaults>
</compile_context>

<pallas_src>
import jax
import jax.numpy as jnp
from jax.experimental import pallas as pl
from jax.experimental.pallas import tpu as pltpu
import numpy as np

_LANE = 128                    # lane-dense width; 128 keeps most shapes pad-free
_TARGET_TILE_BYTES = 4 << 20   # ~4 MiB per tile buffer
_FAST_PATH_BYTES = 256 << 10   # below this, skip pallas_call entirely


def _round_up(v, m):
    return ((v + m - 1) // m) * m


def _mixed_augment_kernel(ab_ref, x_ref, o_ref):
    """ab_ref: (2,) f32 SMEM scalars [a, b]; x_ref/o_ref: (tm, 128) VMEM tiles."""
    a = ab_ref[0]
    b = ab_ref[1]
    # Elementwise hot path: out = a * x + b (compute in f32, store in x dtype).
    o_ref[...] = (a * x_ref[...].astype(jnp.float32) + b).astype(o_ref.dtype)


def _affine_coeffs(probabilities, probabilities_index, weights, weights_index):
    """Derive the scalar affine coefficients (a, b) of the selected sub-policy."""
    probs = probabilities.astype(jnp.float32)
    pidx = probabilities_index.astype(jnp.int32)
    w = weights.astype(jnp.float32)
    k = jnp.asarray(weights_index, jnp.int32)

    probs_k = jnp.take(probs, k, axis=0)          # (L,)
    bits_k = jnp.take(pidx, k, axis=0)            # (L,)
    p_k = jnp.prod(jnp.where(bits_k == 1, probs_k, 1.0 - probs_k))
    w_sum = jnp.sum(w)
    w_k = jnp.take(w, k)
    a = w_k * p_k
    b = w_k * (1.0 - p_k) + (w_sum - w_k)
    return a, b


def mixed_augment(x, probabilities, probabilities_index, magnitudes, weights,
                  weights_index):
    """x: (B, C, H, W) image tensor. `magnitudes` is accepted for API fidelity
    but does not affect the forward value (it cancels via detach + re-add)."""
    del magnitudes  # forward value is independent of magnitudes
    # TODO(synk): DADA's straight-through gradients w.r.t. probabilities /
    # magnitudes are not provided; this implements the forward value only.

    a, b = _affine_coeffs(probabilities, probabilities_index, weights,
                          weights_index)

    orig_shape = x.shape
    numel = int(np.prod(orig_shape))
    itemsize = jnp.dtype(x.dtype).itemsize

    # --- tiny-input fast path: fused XLA elementwise beats kernel overhead ---
    if numel * itemsize < _FAST_PATH_BYTES:
        return (a * x.astype(jnp.float32) + b).astype(x.dtype)

    # --- lane-dense layout: flat -> (rows, 128); pad only to a LANE multiple --
    rows = -(-numel // _LANE)
    padded_numel = rows * _LANE
    x_flat = x.reshape(-1)
    if padded_numel != numel:                      # at most 127 extra elements
        x_flat = jnp.pad(x_flat, (0, padded_numel - numel))
    x2 = x_flat.reshape(rows, _LANE)

    # dtype-aware sublane multiple (8 f32 / 16 bf16 / 32 int8,fp8)
    sub = max(8, 32 // itemsize)
    tm_budget = max(sub, (_TARGET_TILE_BYTES // (_LANE * itemsize)) // sub * sub)
    # at least two tiles whenever possible so both v7x TensorCores stream
    half_rows = _round_up(-(-rows // 2), sub)
    tm = max(sub, min(tm_budget, half_rows))
    grid = (pl.cdiv(rows, tm),)                    # partial last block is masked

    tile_bytes = tm * _LANE * itemsize
    # 2 arrays (in + out) x 2 pipeline buffers + slack, capped well under v7x VMEM.
    vmem_limit = int(min(48 << 20, max(16 << 20, 4 * tile_bytes + (4 << 20))))

    ab = jnp.stack([a, b]).astype(jnp.float32)     # (2,) scalar-prefetch payload

    out2 = pl.pallas_call(
        _mixed_augment_kernel,
        out_shape=jax.ShapeDtypeStruct((rows, _LANE), x.dtype),
        grid_spec=pltpu.PrefetchScalarGridSpec(
            num_scalar_prefetch=1,
            grid=grid,
            in_specs=[pl.BlockSpec((tm, _LANE), lambda i, ab_r: (i, 0))],
            out_specs=pl.BlockSpec((tm, _LANE), lambda i, ab_r: (i, 0)),
        ),
        compiler_params=pltpu.CompilerParams(
            dimension_semantics=("parallel",),
            vmem_limit_bytes=vmem_limit),
        cost_estimate=pl.CostEstimate(
            flops=2 * padded_numel,
            transcendentals=0,
            bytes_accessed=2 * padded_numel * itemsize),
    )(ab, x2)

    out_flat = out2.reshape(-1)
    if padded_numel != numel:
        out_flat = out_flat[:numel]
    return out_flat.reshape(orig_shape)


def reference_forward(x, probabilities, probabilities_index, magnitudes,
                      weights, weights_index):
    """Direct transcription of the PyTorch forward (value semantics)."""
    x = np.asarray(x, np.float32)
    probabilities = np.asarray(probabilities, np.float32)
    probabilities_index = np.asarray(probabilities_index, np.int64)
    magnitudes = np.asarray(magnitudes, np.float32)
    weights = np.asarray(weights, np.float32)
    N, L = probabilities.shape
    total = 0.0
    for i in range(N):
        if int(weights_index) == i:
            index = sum(int(probabilities_index[i, j]) << j for j in range(L))
            com = 0.0
            images = x
            adds = 0.0
            for sel in range(2 ** L):
                tp = 1.0
                for j in range(L):
                    if sel & (1 << j):
                        tp = tp * probabilities[i, j]
                        if sel == index:
                            images = images - magnitudes[i, j]
                            adds = adds + magnitudes[i, j]
                    else:
                        tp = tp * (1.0 - probabilities[i, j])
                if sel == index:
                    images = images + adds  # .detach() only affects grads
                    com = com + tp * images
                else:
                    com = com + tp
            total = total + weights[i] * com
        else:
            total = total + weights[i]
    return total


if __name__ == "__main__":
    key = jax.random.PRNGKey(0)
    k1, k2, k3, k4, k5 = jax.random.split(key, 5)

    num_sub_policies, ops_per_policy = 5, 2
    probabilities = jax.nn.sigmoid(
        jax.random.normal(k2, (num_sub_policies, ops_per_policy)))
    probabilities_index = jax.random.bernoulli(
        k3, 0.5, (num_sub_policies, ops_per_policy)).astype(jnp.int32)
    magnitudes = jax.nn.sigmoid(
        jax.random.normal(k4, (num_sub_policies, ops_per_policy)))
    weights = jax.nn.softmax(jax.random.normal(k5, (num_sub_policies,)))

    def check(shape, widx):
        xi = jax.random.normal(k1, shape, dtype=jnp.float32)
        out = jax.block_until_ready(
            mixed_augment(xi, probabilities, probabilities_index, magnitudes,
                          weights, jnp.int32(widx)))
        ref = reference_forward(np.asarray(xi), np.asarray(probabilities),
                                np.asarray(probabilities_index),
                                np.asarray(magnitudes), np.asarray(weights),
                                widx)
        np.testing.assert_allclose(np.asarray(out), ref, rtol=1e-5, atol=1e-5)

    # Small per-image case (takes the fused-XLA fast path).
    check((2, 4, 16, 16), 2)
    # Lane-aligned batch that exercises the Pallas kernel (2 parallel row tiles).
    check((8, 3, 64, 64), 1)
    # Ragged size (numel % 128 != 0): exercises the LANE pad + masked last block.
    check((3, 3, 150, 150), 4)

    print("KERNEL_OK")
</pallas_src>

<mosaic_0001>
module attributes {stable_mosaic.version = 11 : i64} {
  func.func @_mixed_augment_kernel(%arg0: i32, %arg1: memref<2xf32, #tpu.memory_space<smem>>, %arg2: memref<384x128xf32, #tpu.memory_space<vmem>>, %arg3: memref<384x128xf32, #tpu.memory_space<vmem>>) attributes {dimension_semantics = [#tpu.dimension_semantics<parallel>], iteration_bounds = array<i64: 2>, scalar_prefetch = 1 : i64, scratch_operands = 0 : i64, tpu.core_type = #tpu.core_type<tc>, window_params = [{transform_indices = @transform_0, window_bounds = array<i64: 384, 128>}, {transform_indices = @transform_1, window_bounds = array<i64: 384, 128>}]} {
    %c0 = arith.constant 0 : index
    %0 = memref.load %arg1[%c0] : memref<2xf32, #tpu.memory_space<smem>>
    %c1 = arith.constant 1 : index
    %1 = memref.load %arg1[%c1] : memref<2xf32, #tpu.memory_space<smem>>
    %c0_0 = arith.constant 0 : index
    %c0_1 = arith.constant 0 : index
    %2 = vector.load %arg2[%c0_0, %c0_1] : memref<384x128xf32, #tpu.memory_space<vmem>>, vector<384x128xf32>
    %3 = vector.broadcast %0 : f32 to vector<384x128xf32>
    %4 = arith.mulf %3, %2 : vector<384x128xf32>
    %5 = vector.broadcast %1 : f32 to vector<384x128xf32>
    %6 = arith.addf %4, %5 : vector<384x128xf32>
    %c0_2 = arith.constant 0 : index
    %c0_3 = arith.constant 0 : index
    %7 = vector.load %arg3[%c0_2, %c0_3] : memref<384x128xf32, #tpu.memory_space<vmem>>, vector<384x128xf32>
    tpu.vector_store %arg3[%c0_2, %c0_3], %6 {strides = array<i32>} : memref<384x128xf32, #tpu.memory_space<vmem>>, vector<384x128xf32>,
    return
  }
  func.func @transform_0(%arg0: i32, %arg1: memref<2xf32, #tpu.memory_space<smem>>) -> (i32, i32) {
    %c0_i32 = arith.constant 0 : i32
    %c0_i32_0 = arith.constant 0 : i32
    return %arg0, %c0_i32 : i32, i32
  }
  func.func @transform_1(%arg0: i32, %arg1: memref<2xf32, #tpu.memory_space<smem>>) -> (i32, i32) {
    %c0_i32 = arith.constant 0 : i32
    %c0_i32_0 = arith.constant 0 : i32
    return %arg0, %c0_i32 : i32, i32
  }
}

</mosaic_0001>

<bundles_post_ra>
// kernel: tpu_custom_call.1
= control target key start
LH: loop header
LB: loop body
LE: loop exit
PB: predicated region body
PF: predicated region fallthrough
CT: control target
= control target key end

     0   :  { %s994_s0 = inlined_call_operand.hbm [shape: f32[2], index: 0, kind: input, shape index: {}]   ;;  %s995_s1 = inlined_call_operand.hbm [shape: f32[768,128], index: 1, kind: input, shape index: {}]   ;;  %s996_s2 = inlined_call_operand.hbm [shape: f32[768,128], index: 2, kind: output, shape index: {}]  }
   0x1   :  { %s489_s11 = scalar_lea.hbm %s994_s0, 16 }
   0x2   :  { %p490_p0 = scmp.ne.s32.totalorder %s994_s0, %s489_s11  ;;  %p493_p1 = scmp.lt.u32.totalorder %s489_s11, %s994_s0 }
   0x4   :  { %p495_p2 = pnand %p493_p1, %p490_p0 }
   0x6   :  { %498 = shalt.err (!%p495_p2)  }
   0x7   :  { %s599_s16 = smov [#allocation3]  }
   0x8   :  { %8 = dma.hbm_to_smem %s994_s0, 16, %s599_s16, [#allocation2] }
   0x9   :  { %573 = dma.done.wait [#allocation2], 16 }
   0xa   :  { %574 = vsyncadd [#allocation2], 4294967280 }
   0xb   :  { %10 = sfence }
   0xc   :  { %11 = vsyncpa [#allocation5], 0 }
   0xd   :  { %13 = vsyncpa [#allocation5 + $0x1], 0 }
   0xe   :  { %14 = vsyncpa [#allocation6], 0 }
   0xf   :  { %16 = vsyncpa [#allocation6 + $0x1], 0  ;;  %s633_s19 = smov 0   ;;  %s635_s20 = smov 0  }
  0x10   :  { %s637_s21 = smov 0   ;;  %s639_s22 = smov 0  }
  0x11 LB: > { %s654_s0 = sadd.s32 4294967295, %s597_s22   ;;  %s425_s23 = sadd.s32 4294967294, %s597_s22   ;;  %s597_s22 = sphi %s639_s22, %s1008_s22   ;;  %s593_s21 = sphi %s637_s21, %s1007_s21   ;;  %s589_s20 = sphi %s635_s20, %s1006_s20   ;;  %s585_s19 = sphi %s633_s19, %s1005_s19  }
  0x12   : > { %s658_s24 = sadd.s32 1, %s597_s22   ;;  %s29_s25 = sadd.s32 1, %s593_s21 }
  0x13   : > { %s26_s26 = ssub.s32 %s597_s22, %s658_s24  ;;  %p36_p3 = scmp.ne.s32.totalorder %s593_s21, %s589_s20 }
  0x14   : > { %p27_p4 = scmp.eq.s32.totalorder %s26_s26, 0  ;;  %p37_p5 = scmp.eq.s32.totalorder %s597_s22, 0 }
  0x15   : > { %p42_p6 = scmp.ne.s32.totalorder %s589_s20, %s585_s19  ;;  %p43_p7 = scmp.eq.s32.totalorder %s654_s0, 0 }
  0x16   : > { %s670_s27 = scalar_select %p27_p4, %s593_s21, %s29_s25  }
  0x17   : > { %p38_p8 = por %p37_p5, %p36_p3  ;;  %p672_p9 = por %p43_p7, %p42_p6 }
  0x18   : > { %p66_p10 = scmp.eq.s32.totalorder %s654_s0, 1  ;;  %p72_p11 = scmp.eq.s32.totalorder %s425_s23, 1 }
  0x19   : > { %p450_p13 = scmp.lt.s32.totalorder %s597_s22, 2  ;;  %s92_s3 = sand.u32 1, %s593_s21  }
  0x1a   : > { %p679_p0 = por %p66_p10, %p36_p3  ;;  %p683_p1 = por %p72_p11, %p42_p6 }
  0x1b   : > { %s434_s4 = smul.u32 6144, %s597_s22  ;;  %p694_p2 = pnand %p450_p13, %p38_p8 }
  0x1c   : > { %s999_s29 = scalar_select %p679_p0, 1, 0 }
  0x1d   : > { %s1000_s30 = scalar_select %p683_p1, 1, 0 }
  0x1e   : > { %s436_s5 = smul.u32 384, %s92_s3  ;;  %s692_s8 = scalar_lea.hbm %s995_s1, %s434_s4 }
  0x1f   : > { %s700_s12 = scalar_lea.sflag [#allocation5], %s92_s3  ;;  %s499_s13 = scalar_lea.hbm %s692_s8, 6144 }
  0x20   : > { %s96_s10 = scalar_lea.vmem [#allocation4], %s436_s5  ;;  %p500_p3 = scmp.ne.s32.totalorder %s692_s8, %s499_s13 }
  0x21   : > { %s103_s11 = sshll.u32 %s96_s10, 4  ;;  %p501_p4 = pneg %p694_p2  ;;  %s698_s11 = int_to_ptr.vmem [resolvable:$true] %s103_s11 }
  0x22   : > { %s504_s16 = scalar_lea.hbm %s995_s1, 12288  ;;  %p505_p7 = scmp.lt.u32.totalorder %s692_s8, %s995_s1 }
  0x23   : > { %p502_p5 = pnand %p501_p4, %p500_p3  ;;  %p506_p8 = scmp.lt.u32.totalorder %s504_s16, %s499_s13 }
  0x24   : > { %p508_p11 = scmp.lt.u32.totalorder %s499_s13, %s692_s8 }
  0x25   : > { %p503_p6 = pneg %p502_p5  ;;  %p507_p10 = por %p506_p8, %p505_p7 }
  0x27   : > { %p509_p13 = por %p508_p11, %p507_p10 }
  0x29   : > { %p510_p12 = pnand %p509_p13, %p503_p6 }
  0x2b   : > { %513 = shalt.err (!%p510_p12)
}
  0x2c   : > { %s514_s23 = scalar_lea.vmem %s698_s11, 6144  ;;  %s600_s25 = smov [#allocation4]  }
  0x2d   : > { %p515_p3 = scmp.ne.s32.totalorder %s698_s11, %s514_s23  ;;  %s519_s26 = sshll.u32 %s600_s25, 4  ;;  %s520_s26 = int_to_ptr.vmem [resolvable:$false] %s519_s26 }
  0x2e   : > { %s521_s3 = scalar_lea.vmem %s520_s26, 12288  ;;  %p522_p0 = scmp.lt.s32.totalorder %s698_s11, %s520_s26 }
  0x2f   : > { %p517_p5 = pnand %p515_p3, %p501_p4  ;;  %p523_p7 = scmp.lt.s32.totalorder %s521_s3, %s514_s23 }
  0x31   : > { %p518_p1 = pneg %p517_p5  ;;  %p524_p8 = por %p523_p7, %p522_p0 }
  0x33   : > { %p525_p10 = pnand %p524_p8, %p518_p1 }
  0x35   : > { %528 = shalt.err (!%p525_p10)
}
  0x36   : > { %s601_s4 = smov 128   ;;  %s602_s5 = smov 8  }
  0x37   : > { %445 = dma.hbm_to_vmem [thread:$0]  (!%p694_p2), %s692_s8, 6144, %s698_s11, %s700_s12, %s601_s4, %s601_s4, %s602_s5  }
  0x38   : > { %p429_p12 = scmp.ge.s32.totalorder %s597_s22, 1  ;;  %p111_p4 = scmp.lt.s32.totalorder %s597_s22, 3 }
  0x3a   : > { %p112_p6 = pnand %p429_p12, %p111_p4 }
  0x3b   : > { %s731_s6 = sand.u32 (!%p112_p6), 1, %s589_s20  }
  0x3c   : > { %115 = sbr.rel (%p112_p6) target bundleno = 121 (0x79), region = 24  ;;  %s118_s10 = scalar_lea.sflag (!%p112_p6), [#allocation5], %s731_s6 }
  0x3d   : > { %s437_s7 = smul.u32 (!%p112_p6), 384, %s731_s6 }
  0x3f   : > { %s737_s13 = scalar_lea.vmem (!%p112_p6), [#allocation4], %s437_s7 }
  0x43   : > { %576 = dma.done.wait (%p672_p9), %s118_s10, 6144  }
  0x44   : > { %578 = vsyncadd (%p672_p9), %s118_s10, 4294961152  ;;  %s142_s8 = sld [smem:[#allocation3]]  ;;  %s430_s9 = sld [smem:[#allocation3 + $0x1]]  ;;  %v144_v0 = vld [vmem:[%s737_s13] sm:$0xff]  ;;  %v145_v3 = vld [vmem:[%s737_s13 + $0x8] sm:$0xff] }
  0x45   : > { %v146_v6 = vld [vmem:[%s737_s13 + $0x10] sm:$0xff]  ;;  %v147_v7 = vld [vmem:[%s737_s13 + $0x18] sm:$0xff]  ;;  %v148_v8 = vld [vmem:[%s737_s13 + $0x20] sm:$0xff]  ;;  %s776_s28 = scalar_lea.vmem [#allocation7], %s437_s7  ;;  %s435_s11 = smul.u32 6144, %s654_s0 }
  0x46   : > { %v149_v12 = vld [vmem:[%s737_s13 + $0x28] sm:$0xff]  ;;  %v150_v13 = vld [vmem:[%s737_s13 + $0x30] sm:$0xff]  ;;  %v151_v14 = vld [vmem:[%s737_s13 + $0x38] sm:$0xff]  ;;  %s352_s12 = sshll.u32 %s776_s28, 4  ;;  %s339_s16 = scalar_lea.sflag [#allocation6], %s731_s6  ;;  %s938_s12 = int_to_ptr.vmem [resolvable:$true] %s352_s12 }
  0x47   : > { %v152_v19 = vld [vmem:[%s737_s13 + $0x40] sm:$0xff]  ;;  %v153_v20 = vld [vmem:[%s737_s13 + $0x48] sm:$0xff]  ;;  %v154_v21 = vld [vmem:[%s737_s13 + $0x50] sm:$0xff]  ;;  %s947_s15 = scalar_lea.hbm %s996_s2, %s435_s11  ;;  %s529_s17 = scalar_lea.vmem %s938_s12, 6144 }
  0x48   : > { %v155_v26 = vld [vmem:[%s737_s13 + $0x58] sm:$0xff]  ;;  %v156_v27 = vld [vmem:[%s737_s13 + $0x60] sm:$0xff]  ;;  %v157_v28 = vld [vmem:[%s737_s13 + $0x68] sm:$0xff]  ;;  %p530_p9 = scmp.ne.s32.totalorder %s938_s12, %s529_s17  ;;  %p1002_p0 = scmp.ne.s32.totalorder %s999_s29, 0 }
  0x49   : > { %v158_v33 = vld [vmem:[%s737_s13 + $0x70] sm:$0xff]  ;;  %v159_v34 = vld [vmem:[%s737_s13 + $0x78] sm:$0xff]  ;;  %v160_v39 = vld [vmem:[%s737_s13 + $0x80] sm:$0xff]  ;;  %s603_s18 = smov [#allocation7]  }
  0x4a   : > { %v744_v1 = vstv %s142_s8  ;;  %v746_v2 = vstv %s430_s9  ;;  %v161_v40 = vld [vmem:[%s737_s13 + $0x88] sm:$0xff]  ;;  %v162_v45 = vld [vmem:[%s737_s13 + $0x90] sm:$0xff]  ;;  %p531_p1 = pnand %p530_p9, %p1002_p0  ;;  %s533_s23 = sshll.u32 %s603_s18, 4  ;;  %s534_s23 = int_to_ptr.vmem [resolvable:$false] %s533_s23 }
  0x4b   : > { %v193_v4 = vmul.f32 %v744_v1, %v144_v0  ;;  %v194_v5 = vmul.f32 %v744_v1, %v145_v3  ;;  %v195_v9 = vmul.f32 %v744_v1, %v146_v6  ;;  %v196_v10 = vmul.f32 %v744_v1, %v147_v7  ;;  %v163_v46 = vld [vmem:[%s737_s13 + $0x98] sm:$0xff]  ;;  %v164_v47 = vld [vmem:[%s737_s13 + $0xa0] sm:$0xff]  ;;  %v165_v52 = vld [vmem:[%s737_s13 + $0xa8] sm:$0xff]  ;;  %s535_s25 = scalar_lea.vmem %s534_s23, 12288  ;;  %p536_p11 = scmp.lt.s32.totalorder %s938_s12, %s534_s23 }
  0x4c   : > { %v197_v11 = vmul.f32 %v744_v1, %v148_v8  ;;  %v198_v17 = vmul.f32 %v744_v1, %v149_v12  ;;  %v199_v18 = vmul.f32 %v744_v1, %v150_v13  ;;  %v200_v25 = vmul.f32 %v744_v1, %v151_v14  ;;  %v166_v53 = vld [vmem:[%s737_s13 + $0xb0] sm:$0xff]  ;;  %v167_v58 = vld [vmem:[%s737_s13 + $0xb8] sm:$0xff]  ;;  %v168_v63 = vld [vmem:[%s737_s13 + $0xc0] sm:$0xff]  ;;  %p532_p2 = pneg %p531_p1  ;;  %p537_p13 = scmp.lt.s32.totalorder %s535_s25, %s529_s17 }
  0x4d   : > { %v242_v15 = vadd.f32 %v746_v2, %v193_v4  ;;  %v243_v16 = vadd.f32 %v746_v2, %v194_v5  ;;  %v244_v22 = vadd.f32 %v746_v2, %v195_v9  ;;  %v245_v23 = vadd.f32 %v746_v2, %v196_v10  ;;  %v169_v0 = vld [vmem:[%s737_s13 + $0xc8] sm:$0xff]  ;;  %v170_v7 = vld [vmem:[%s737_s13 + $0xd0] sm:$0xff]  ;;  %v171_v8 = vld [vmem:[%s737_s13 + $0xd8] sm:$0xff] }
  0x4e   : > { %v246_v24 = vadd.f32 %v746_v2, %v197_v11  ;;  %v247_v29 = vadd.f32 %v746_v2, %v198_v17  ;;  %v248_v30 = vadd.f32 %v746_v2, %v199_v18  ;;  %v201_v31 = vmul.f32 %v744_v1, %v152_v19  ;;  %v172_v9 = vld [vmem:[%s737_s13 + $0xe0] sm:$0xff]  ;;  %v173_v14 = vld [vmem:[%s737_s13 + $0xe8] sm:$0xff]  ;;  %p538_p3 = por %p537_p13, %p536_p11 }
  0x4f   : > { %290 = vst [vmem:[%s776_s28] sm:$0xff] %v242_v15  ;;  %291 = vst [vmem:[%s776_s28 + $0x8] sm:$0xff] %v243_v16  ;;  %v202_v32 = vmul.f32 %v744_v1, %v153_v20  ;;  %v249_v35 = vadd.f32 %v746_v2, %v200_v25  ;;  %v203_v36 = vmul.f32 %v744_v1, %v154_v21  ;;  %v174_v15 = vld [vmem:[%s737_s13 + $0xf0] sm:$0xff]  ;;  %v175_v20 = vld [vmem:[%s737_s13 + $0xf8] sm:$0xff] }
  0x50   : > { %292 = vst [vmem:[%s776_s28 + $0x10] sm:$0xff] %v244_v22  ;;  %293 = vst [vmem:[%s776_s28 + $0x18] sm:$0xff] %v245_v23  ;;  %v204_v37 = vmul.f32 %v744_v1, %v155_v26  ;;  %v205_v38 = vmul.f32 %v744_v1, %v156_v27  ;;  %v250_v41 = vadd.f32 %v746_v2, %v201_v31  ;;  %v176_v25 = vld [vmem:[%s737_s13 + $0x100] sm:$0xff]  ;;  %v177_v26 = vld [vmem:[%s737_s13 + $0x108] sm:$0xff]  ;;  %p539_p5 = pnand %p538_p3, %p532_p2 }
  0x51   : > { %294 = vst [vmem:[%s776_s28 + $0x20] sm:$0xff] %v246_v24  ;;  %295 = vst [vmem:[%s776_s28 + $0x28] sm:$0xff] %v247_v29  ;;  %v251_v42 = vadd.f32 %v746_v2, %v202_v32  ;;  %v206_v43 = vmul.f32 %v744_v1, %v157_v28  ;;  %v207_v44 = vmul.f32 %v744_v1, %v158_v33  ;;  %v178_v31 = vld [vmem:[%s737_s13 + $0x110] sm:$0xff]  ;;  %v179_v32 = vld [vmem:[%s737_s13 + $0x118] sm:$0xff] }
  0x52   : > { %296 = vst [vmem:[%s776_s28 + $0x30] sm:$0xff] %v248_v30  ;;  %297 = vst [vmem:[%s776_s28 + $0x38] sm:$0xff] %v249_v35  ;;  %v252_v48 = vadd.f32 %v746_v2, %v203_v36  ;;  %v253_v49 = vadd.f32 %v746_v2, %v204_v37  ;;  %v254_v50 = vadd.f32 %v746_v2, %v205_v38  ;;  %v180_v33 = vld [vmem:[%s737_s13 + $0x120] sm:$0xff]  ;;  %v181_v38 = vld [vmem:[%s737_s13 + $0x128] sm:$0xff] }
  0x53   : > { %v208_v51 = vmul.f32 %v744_v1, %v159_v34  ;;  %298 = vst [vmem:[%s776_s28 + $0x40] sm:$0xff] %v250_v41  ;;  %299 = vst [vmem:[%s776_s28 + $0x48] sm:$0xff] %v251_v42  ;;  %v255_v54 = vadd.f32 %v746_v2, %v206_v43  ;;  %v256_v55 = vadd.f32 %v746_v2, %v207_v44  ;;  %v183_v44 = vld [vmem:[%s737_s13 + $0x138] sm:$0xff] }
  0x54   : > { %v209_v56 = vmul.f32 %v744_v1, %v160_v39  ;;  %v210_v57 = vmul.f32 %v744_v1, %v161_v40  ;;  %300 = vst [vmem:[%s776_s28 + $0x50] sm:$0xff] %v252_v48  ;;  %301 = vst [vmem:[%s776_s28 + $0x58] sm:$0xff] %v253_v49  ;;  %v211_v60 = vmul.f32 %v744_v1, %v162_v45  ;;  %v182_v39 = vld [vmem:[%s737_s13 + $0x130] sm:$0xff]  ;;  %v184_v49 = vld [vmem:[%s737_s13 + $0x140] sm:$0xff] }
  0x55   : > { %302 = vst [vmem:[%s776_s28 + $0x60] sm:$0xff] %v254_v50  ;;  %v257_v59 = vadd.f32 %v746_v2, %v208_v51  ;;  %v212_v61 = vmul.f32 %v744_v1, %v163_v46  ;;  %v213_v62 = vmul.f32 %v744_v1, %v164_v47  ;;  %303 = vst [vmem:[%s776_s28 + $0x68] sm:$0xff] %v255_v54  ;;  %v185_v50 = vld [vmem:[%s737_s13 + $0x148] sm:$0xff] }
  0x56   : > { %304 = vst [vmem:[%s776_s28 + $0x70] sm:$0xff] %v256_v55  ;;  %v258_v3 = vadd.f32 %v746_v2, %v209_v56  ;;  %v259_v4 = vadd.f32 %v746_v2, %v210_v57  ;;  %v214_v5 = vmul.f32 %v744_v1, %v165_v52  ;;  %v215_v6 = vmul.f32 %v744_v1, %v166_v53  ;;  %v186_v55 = vld [vmem:[%s737_s13 + $0x150] sm:$0xff]  ;;  %v187_v56 = vld [vmem:[%s737_s13 + $0x158] sm:$0xff]  ;;  %v188_v57 = vld [vmem:[%s737_s13 + $0x160] sm:$0xff] }
  0x57   : > { %305 = vst [vmem:[%s776_s28 + $0x78] sm:$0xff] %v257_v59  ;;  %v260_v10 = vadd.f32 %v746_v2, %v211_v60  ;;  %v261_v11 = vadd.f32 %v746_v2, %v212_v61  ;;  %v262_v12 = vadd.f32 %v746_v2, %v213_v62  ;;  %v216_v13 = vmul.f32 %v744_v1, %v167_v58  ;;  %v189_v62 = vld [vmem:[%s737_s13 + $0x168] sm:$0xff] }
  0x58   : > { %306 = vst [vmem:[%s776_s28 + $0x80] sm:$0xff] %v258_v3  ;;  %307 = vst [vmem:[%s776_s28 + $0x88] sm:$0xff] %v259_v4  ;;  %v263_v16 = vadd.f32 %v746_v2, %v214_v5  ;;  %v264_v17 = vadd.f32 %v746_v2, %v215_v6  ;;  %v217_v18 = vmul.f32 %v744_v1, %v168_v63  ;;  %v190_v63 = vld [vmem:[%s737_s13 + $0x170] sm:$0xff]  ;;  %v191_v6 = vld [vmem:[%s737_s13 + $0x178] sm:$0xff] }
  0x59   : > { %v218_v19 = vmul.f32 %v744_v1, %v169_v0  ;;  %308 = vst [vmem:[%s776_s28 + $0x90] sm:$0xff] %v260_v10  ;;  %309 = vst [vmem:[%s776_s28 + $0x98] sm:$0xff] %v261_v11  ;;  %v265_v21 = vadd.f32 %v746_v2, %v216_v13  ;;  %v219_v22 = vmul.f32 %v744_v1, %v170_v7 }
  0x5a   : > { %310 = vst [vmem:[%s776_s28 + $0xa0] sm:$0xff] %v262_v12  ;;  %v220_v23 = vmul.f32 %v744_v1, %v171_v8  ;;  %v221_v24 = vmul.f32 %v744_v1, %v172_v9  ;;  %311 = vst [vmem:[%s776_s28 + $0xa8] sm:$0xff] %v263_v16  ;;  %v266_v27 = vadd.f32 %v746_v2, %v217_v18 }
  0x5b   : > { %312 = vst [vmem:[%s776_s28 + $0xb0] sm:$0xff] %v264_v17  ;;  %v267_v28 = vadd.f32 %v746_v2, %v218_v19  ;;  %v222_v29 = vmul.f32 %v744_v1, %v173_v14  ;;  %v223_v30 = vmul.f32 %v744_v1, %v174_v15  ;;  %313 = vst [vmem:[%s776_s28 + $0xb8] sm:$0xff] %v265_v21 }
  0x5c   : > { %v268_v34 = vadd.f32 %v746_v2, %v219_v22  ;;  %v269_v35 = vadd.f32 %v746_v2, %v220_v23  ;;  %v270_v36 = vadd.f32 %v746_v2, %v221_v24  ;;  %v224_v37 = vmul.f32 %v744_v1, %v175_v20  ;;  %314 = vst [vmem:[%s776_s28 + $0xc0] sm:$0xff] %v266_v27 }
  0x5d   : > { %315 = vst [vmem:[%s776_s28 + $0xc8] sm:$0xff] %v267_v28  ;;  %v271_v40 = vadd.f32 %v746_v2, %v222_v29  ;;  %v272_v41 = vadd.f32 %v746_v2, %v223_v30  ;;  %v225_v42 = vmul.f32 %v744_v1, %v176_v25  ;;  %v226_v43 = vmul.f32 %v744_v1, %v177_v26 }
  0x5e   : > { %316 = vst [vmem:[%s776_s28 + $0xd0] sm:$0xff] %v268_v34  ;;  %317 = vst [vmem:[%s776_s28 + $0xd8] sm:$0xff] %v269_v35  ;;  %v273_v45 = vadd.f32 %v746_v2, %v224_v37  ;;  %v227_v46 = vmul.f32 %v744_v1, %v178_v31  ;;  %v228_v47 = vmul.f32 %v744_v1, %v179_v32 }
  0x5f   : > { %318 = vst [vmem:[%s776_s28 + $0xe0] sm:$0xff] %v270_v36  ;;  %v229_v48 = vmul.f32 %v744_v1, %v180_v33  ;;  %319 = vst [vmem:[%s776_s28 + $0xe8] sm:$0xff] %v271_v40  ;;  %v274_v51 = vadd.f32 %v746_v2, %v225_v42  ;;  %v275_v52 = vadd.f32 %v746_v2, %v226_v43 }
  0x60   : > { %320 = vst [vmem:[%s776_s28 + $0xf0] sm:$0xff] %v272_v41  ;;  %v230_v53 = vmul.f32 %v744_v1, %v181_v38  ;;  %v231_v54 = vmul.f32 %v744_v1, %v182_v39  ;;  %321 = vst [vmem:[%s776_s28 + $0xf8] sm:$0xff] %v273_v45  ;;  %v276_v58 = vadd.f32 %v746_v2, %v227_v46 }
  0x61   : > { %v277_v59 = vadd.f32 %v746_v2, %v228_v47  ;;  %v278_v60 = vadd.f32 %v746_v2, %v229_v48  ;;  %v232_v61 = vmul.f32 %v744_v1, %v183_v44  ;;  %322 = vst [vmem:[%s776_s28 + $0x100] sm:$0xff] %v274_v51  ;;  %323 = vst [vmem:[%s776_s28 + $0x108] sm:$0xff] %v275_v52 }
  0x62   : > { %v279_v0 = vadd.f32 %v746_v2, %v230_v53  ;;  %v280_v3 = vadd.f32 %v746_v2, %v231_v54  ;;  %v233_v4 = vmul.f32 %v744_v1, %v184_v49  ;;  %v234_v5 = vmul.f32 %v744_v1, %v185_v50  ;;  %324 = vst [vmem:[%s776_s28 + $0x110] sm:$0xff] %v276_v58 }
  0x63   : > { %325 = vst [vmem:[%s776_s28 + $0x118] sm:$0xff] %v277_v59  ;;  %326 = vst [vmem:[%s776_s28 + $0x120] sm:$0xff] %v278_v60  ;;  %v281_v7 = vadd.f32 %v746_v2, %v232_v61  ;;  %v235_v8 = vmul.f32 %v744_v1, %v186_v55  ;;  %v236_v9 = vmul.f32 %v744_v1, %v187_v56 }
  0x64   : > { %v237_v10 = vmul.f32 %v744_v1, %v188_v57  ;;  %327 = vst [vmem:[%s776_s28 + $0x128] sm:$0xff] %v279_v0  ;;  %328 = vst [vmem:[%s776_s28 + $0x130] sm:$0xff] %v280_v3  ;;  %v282_v11 = vadd.f32 %v746_v2, %v233_v4  ;;  %v283_v12 = vadd.f32 %v746_v2, %v234_v5 }
  0x65   : > { %v238_v13 = vmul.f32 %v744_v1, %v189_v62  ;;  %v239_v14 = vmul.f32 %v744_v1, %v190_v63  ;;  %329 = vst [vmem:[%s776_s28 + $0x138] sm:$0xff] %v281_v7  ;;  %v284_v15 = vadd.f32 %v746_v2, %v235_v8  ;;  %v285_v16 = vadd.f32 %v746_v2, %v236_v9 }
  0x66   : > { %v286_v17 = vadd.f32 %v746_v2, %v237_v10  ;;  %v240_v18 = vmul.f32 %v744_v1, %v191_v6  ;;  %330 = vst [vmem:[%s776_s28 + $0x140] sm:$0xff] %v282_v11  ;;  %331 = vst [vmem:[%s776_s28 + $0x148] sm:$0xff] %v283_v12 }
  0x67   : > { %v287_v19 = vadd.f32 %v746_v2, %v238_v13  ;;  %v288_v20 = vadd.f32 %v746_v2, %v239_v14  ;;  %332 = vst [vmem:[%s776_s28 + $0x150] sm:$0xff] %v284_v15  ;;  %333 = vst [vmem:[%s776_s28 + $0x158] sm:$0xff] %v285_v16 }
  0x68   : > { %334 = vst [vmem:[%s776_s28 + $0x160] sm:$0xff] %v286_v17  ;;  %v289_v21 = vadd.f32 %v746_v2, %v240_v18 }
  0x69   : > { %335 = vst [vmem:[%s776_s28 + $0x168] sm:$0xff] %v287_v19  ;;  %336 = vst [vmem:[%s776_s28 + $0x170] sm:$0xff] %v288_v20 }
  0x6a   : > { %337 = vst [vmem:[%s776_s28 + $0x178] sm:$0xff] %v289_v21 }
  0x6b   : > { %542 = shalt.err (!%p539_p5)
}
  0x6c   : > { %s543_s26 = scalar_lea.hbm %s947_s15, 6144  ;;  %s547_s5 = scalar_lea.hbm %s996_s2, 12288 }
  0x6d   : > { %p544_p7 = scmp.ne.s32.totalorder %s947_s15, %s543_s26  ;;  %p548_p12 = scmp.lt.u32.totalorder %s947_s15, %s996_s2 }
  0x6e   : > { %p549_p4 = scmp.lt.u32.totalorder %s547_s5, %s543_s26  ;;  %p551_p9 = scmp.lt.u32.totalorder %s543_s26, %s947_s15 }
  0x6f   : > { %p545_p8 = pnand %p544_p7, %p1002_p0 }
  0x70   : > { %p550_p6 = por %p549_p4, %p548_p12 }
  0x71   : > { %p546_p10 = pneg %p545_p8 }
  0x72   : > { %p552_p1 = por %p551_p9, %p550_p6 }
  0x74   : > { %p553_p2 = pnand %p552_p1, %p546_p10 }
  0x76   : > { %556 = shalt.err (!%p553_p2)
}
  0x77   : > { %s604_s13 = smov 128   ;;  %s605_s8 = smov 8  }
  0x78   : > { %440 = dma.vmem_to_hbm [thread:$0]  (%p1002_p0), %s938_s12, 6144, %s947_s15, %s339_s16, %s604_s13, %s604_s13, %s605_s8  }
  0x79 PF: > { %s367_s9 = sand.u32 1, %s585_s19   ;;  %p1003_p11 = scmp.ne.s32.totalorder %s1000_s30, 0 }
  0x7a   : > { %p1004_p13 = scmp.ge.s32.totalorder %s597_s22, 2  ;;  %s368_s28 = scalar_lea.sflag [#allocation6], %s367_s9 }
  0x7c   : > { %p447_p3 = pnand %p1004_p13, %p1003_p11 }
  0x7e   : > { %580 = dma.done.wait (!%p447_p3), %s368_s28, 6144  }
  0x7f   : > { %582 = vsyncadd (!%p447_p3), %s368_s28, 4294961152  ;;  %p19_p5 = scmp.ge.s32.totalorder %s658_s24, 4   ;;  %s1005_s19 = smov %s589_s20 }
  0x80   : > { %s1006_s20 = smov %s593_s21  ;;  %s1007_s21 = smov %s670_s27 }
  0x81   : > { %s1008_s22 = smov %s658_s24  ;;  %21 = sbr.rel (!%p19_p5) target bundleno = 17 (0x11), region = 69 }
  0x88   :  { %373 = vsyncpa [#allocation5], 1 }
  0x89   :  { %375 = vsyncpa [#allocation5 + $0x1], 1 }
  0x8a   :  { %376 = vsyncpa [#allocation6], 1 }
  0x8b   :  { %378 = vsyncpa [#allocation6 + $0x1], 1 }

</bundles_post_ra>
